<compile_context>
chip_gen: v7x
topology: tpu7x:2x2x1
jax: 0.10.0
libtpu: 0.0.40
codegen_flags: <defaults>
</compile_context>

<pallas_src>
import functools
import math

import jax
import jax.numpy as jnp
from jax.experimental import pallas as pl
from jax.experimental.pallas import tpu as pltpu


# ---------------------------------------------------------------------------
# Hardware-aware sizing helpers
# ---------------------------------------------------------------------------

def _device_kind() -> str:
    try:
        return jax.devices()[0].device_kind.lower()
    except Exception:
        return ""


def _vmem_cap_bytes() -> int:
    """Scoped-VMEM limit (bytes) we are willing to request, per generation."""
    kind = _device_kind()
    if "v2" in kind or "v3" in kind:
        return 12 * 1024 * 1024
    if "v4" in kind or "v5" in kind or "v6" in kind:
        return 100 * 1024 * 1024          # 128 MiB physical VMEM
    # v7x (64 MiB physical per TensorCore) and unknown parts: stay conservative.
    return 48 * 1024 * 1024


def mxu_k_multiple() -> int:
    """Preferred contraction-dim alignment for the local MXU."""
    kind = _device_kind()
    if any(t in kind for t in ("v2", "v3", "v4", "v5")):
        return 128                        # 128-wide MXU generations
    return 256                            # v6e / v7x: 2x256^2 MXU


def _choose_tiles(batch, dims, w_isz, x_isz, out_isz, vmem_cap,
                  tile_n=None, tile_b=None, wbuf=3):
    """Pick (tn, tb) so the double-buffered working set fits in vmem_cap."""
    out_f, d_last_in, d0 = dims[-1], dims[-2], dims[0]
    n_layers = len(dims) - 1

    # --- batch tile --------------------------------------------------------
    if tile_b is not None:
        tb = min(tile_b, batch)
    else:
        tb = batch if batch <= 256 else 256
    if tb != batch:
        tb = max(8, (tb // 8) * 8)

    # --- VMEM accounting (BlockSpec buffers + in-kernel f32 temps) ----------
    budget = int(vmem_cap * 0.80)
    fixed = 2 * tb * d0 * x_isz                       # x double buffer
    for i in range(n_layers - 1):                     # resident early layers
        fixed += 2 * (dims[i] * dims[i + 1] + dims[i + 1]) * w_isz
    fixed += 4 * 1024 * 1024                          # compiler-temp slack
    per_tn = (wbuf * d_last_in * w_isz                # final-weight buffers
              + 2 * w_isz                             # final bias buffers
              + 2 * tb * out_isz                      # output double buffer
              + 2 * tb * 4)                           # f32 accumulator temps

    if tile_n is not None:
        tn = min(tile_n, out_f)
    elif fixed + out_f * per_tn <= budget:
        tn = out_f                                    # whole output in one tile
    else:
        tn_cap = max((budget - fixed) // per_tn, 128)
        tn = max(128, min((out_f // 128) * 128, (tn_cap // 128) * 128))

    # --- keep >= 2 grid points so a 2-TensorCore part (v7x) is not idle -----
    if tile_b is None and batch >= 16:
        n_j = -(-out_f // tn)
        n_b = -(-batch // tb)
        if n_j * n_b < 2:
            tb = max(8, ((batch // 2) // 8) * 8)

    return tn, tb


def _spec(block_shape, index_map, *, buffers=None):
    """BlockSpec, optionally with a non-default pipeline buffer count."""
    if buffers is not None and buffers != 2 and hasattr(pl, "Buffered"):
        try:
            return pl.BlockSpec(block_shape, index_map,
                                pipeline_mode=pl.Buffered(buffers))
        except TypeError:
            pass  # older API without pipeline_mode: fall back to default depth
    return pl.BlockSpec(block_shape, index_map)


# ---------------------------------------------------------------------------
# Fused MLP kernel
# ---------------------------------------------------------------------------

def _fused_decoder_kernel(*refs, n_layers: int):
    # refs = (x_ref, wt0_ref, b0_ref, wt1_ref, b1_ref, ..., out_ref)
    #   x_ref   : (tb, in0)                     compute dtype
    #   wt_i    : (in_i, out_i) full  (i<last)  compute dtype  (pre-transposed W.T)
    #   wt_last : (in_last, tile_n)             compute dtype
    #   b_i     : (1, out_i) / (1, tile_n)      compute dtype
    #   out_ref : (tb, tile_n)                  out dtype
    x_ref = refs[0]
    out_ref = refs[-1]
    p = refs[1:-1]

    h = x_ref[...]
    for i in range(n_layers):
        wt = p[2 * i][...]
        b = p[2 * i + 1][...]
        y = jnp.dot(h, wt, preferred_element_type=jnp.float32)
        y = y + b.astype(jnp.float32)
        if i != n_layers - 1:
            y = jnp.tanh(y)              # f32 epilogue (EUP), v5e-safe
            h = y.astype(wt.dtype)       # back to compute dtype for next MXU pass
        else:
            out_ref[...] = y.astype(out_ref.dtype)


def decoder_forward(x, params, *, tile_n=None, tile_b=None, out_dtype=None,
                    vmem_cap_bytes=None):
    """Forward pass of _Decoder: Linear -> Tanh -> ... -> Linear, fused.

    params: list of (wt, b) with wt already transposed to (in_f, out_f)
            (optionally MXU-padded via pad_decoder_params_for_mxu).
    out_dtype: defaults to x.dtype (bf16 in -> bf16 logits out, f32 accumulation
               stays inside the kernel).
    """
    n_layers = len(params)

    # If params were MXU-padded, zero-pad x to the padded first-layer width.
    w0_in = params[0][0].shape[0]
    if x.shape[1] < w0_in:
        x = jnp.pad(x, ((0, 0), (0, w0_in - x.shape[1])))
    assert x.shape[1] == w0_in, "x feature dim exceeds first-layer input dim"

    batch, in0 = x.shape
    dims = [in0] + [wt.shape[1] for wt, _ in params]
    out_f = dims[-1]
    out_dtype = jnp.dtype(x.dtype if out_dtype is None else out_dtype)

    vmem_cap = _vmem_cap_bytes() if vmem_cap_bytes is None else int(vmem_cap_bytes)
    w_isz = jnp.dtype(params[-1][0].dtype).itemsize
    tn, tb = _choose_tiles(batch, dims, w_isz, jnp.dtype(x.dtype).itemsize,
                           out_dtype.itemsize, vmem_cap,
                           tile_n=tile_n, tile_b=tile_b)
    if tn != out_f:
        assert tn % 128 == 0, "tile_n must be a multiple of 128"
    if tb != batch:
        assert tb % 8 == 0, "tile_b must be a multiple of 8"

    n_j = pl.cdiv(out_f, tn)
    n_b = pl.cdiv(batch, tb)
    # Weight-tile axis outermost, batch-tile axis innermost: the big final
    # weight tile stays resident while cheap x tiles stream past it.
    grid = (n_j, n_b)

    # Triple-buffer the final weight stream only when it actually changes,
    # to hide the fresh-weight seam at each new j (most exposed on v5e HBM BW).
    wbuf = 3 if n_j > 1 else 2

    in_specs = [pl.BlockSpec((tb, in0), lambda j, bi: (bi, 0))]
    flat_args = [x]
    for i, (wt, b) in enumerate(params):
        in_f, of = wt.shape
        b2 = b.reshape(1, of)
        if i != n_layers - 1:
            # Small early layers: whole-array blocks, constant index => DMA'd once.
            in_specs.append(pl.BlockSpec((in_f, of), lambda j, bi: (0, 0)))
            in_specs.append(pl.BlockSpec((1, of), lambda j, bi: (0, 0)))
        else:
            # Large final layer: stream output-feature tiles.
            in_specs.append(_spec((in_f, tn), lambda j, bi: (0, j), buffers=wbuf))
            in_specs.append(pl.BlockSpec((1, tn), lambda j, bi: (0, j)))
        flat_args += [wt, b2]

    out_spec = pl.BlockSpec((tb, tn), lambda j, bi: (bi, j))

    # Cost estimate includes the per-j-tile recompute of the early layers.
    early = sum(dims[i] * dims[i + 1] for i in range(n_layers - 1))
    flops = 2 * batch * (early * n_j + dims[-2] * dims[-1])
    transcendentals = batch * sum(dims[1:-1]) * n_j
    bytes_accessed = (
        x.size * x.dtype.itemsize * n_j
        + batch * out_f * out_dtype.itemsize
        + sum(wt.size * wt.dtype.itemsize + b.size * b.dtype.itemsize
              for wt, b in params)
    )

    kernel = functools.partial(_fused_decoder_kernel, n_layers=n_layers)
    return pl.pallas_call(
        kernel,
        out_shape=jax.ShapeDtypeStruct((batch, out_f), out_dtype),
        grid=grid,
        in_specs=in_specs,
        out_specs=out_spec,
        compiler_params=pltpu.CompilerParams(
            dimension_semantics=("parallel", "parallel"),
            vmem_limit_bytes=int(vmem_cap),
        ),
        cost_estimate=pl.CostEstimate(
            flops=flops,
            transcendentals=transcendentals,
            bytes_accessed=bytes_accessed,
        ),
    )(*flat_args)


# ---------------------------------------------------------------------------
# Parameter helpers
# ---------------------------------------------------------------------------

def init_decoder_params(key, p_dims, dtype=jnp.float32):
    """Init matching the PyTorch module (weight ~ U(-limit, limit) with
    limit = sqrt(3 / ((in+out)/2)); bias ~ N(0, 0.001)), weight stored
    pre-transposed as (in_f, out_f) so the forward path never transposes."""
    params = []
    for i in range(len(p_dims) - 1):
        in_f, out_f = p_dims[i], p_dims[i + 1]
        key, kw, kb = jax.random.split(key, 3)
        n = (in_f + out_f) / 2.0
        limit = math.sqrt(3.0 / n)
        wt = jax.random.uniform(
            kw, (in_f, out_f), minval=-limit, maxval=limit, dtype=jnp.float32
        )
        b = 0.001 * jax.random.normal(kb, (out_f,), dtype=jnp.float32)
        params.append((wt.astype(dtype), b.astype(dtype)))
    return params


def pad_decoder_params_for_mxu(params, multiple=None):
    """Zero-pad every contraction dim (layer input width) up to `multiple`
    (256 on v6e/v7x, 128 on older parts).  Mathematically identical: padded
    weight rows/columns and bias entries are zero, and tanh(0) == 0, so padded
    lanes contribute nothing.  decoder_forward zero-pads x to the padded
    first-layer width.  The final output dim is left untouched."""
    if multiple is None:
        multiple = mxu_k_multiple()
    dims = [params[0][0].shape[0]] + [wt.shape[1] for wt, _ in params]
    pdims = [-(-d // multiple) * multiple for d in dims[:-1]] + [dims[-1]]
    padded = []
    for i, (wt, b) in enumerate(params):
        in_f, of = wt.shape
        ni, no = pdims[i], pdims[i + 1]
        if (ni, no) == (in_f, of):
            padded.append((wt, b))
            continue
        wt_p = jnp.zeros((ni, no), wt.dtype).at[:in_f, :of].set(wt)
        b_p = jnp.zeros((no,), b.dtype).at[:of].set(b)
        padded.append((wt_p, b_p))
    return padded


def decoder_forward_ref(x, params):
    """Pure-JAX f32 reference for sanity checking."""
    n_layers = len(params)
    h = x.astype(jnp.float32)
    for i, (wt, b) in enumerate(params):
        h = h @ wt.astype(jnp.float32) + b.astype(jnp.float32)
        if i != n_layers - 1:
            h = jnp.tanh(h)
    return h


# ---------------------------------------------------------------------------
# Demo / self-test
# ---------------------------------------------------------------------------

if __name__ == "__main__":
    # p_dims as in a MultVAE decoder: [latent_dim, hidden_dim, n_items] (small demo)
    p_dims = [32, 64, 200]
    batch = 12

    key = jax.random.PRNGKey(0)
    key, kx = jax.random.split(key)
    x = jax.random.normal(kx, (batch, p_dims[0]), dtype=jnp.float32)

    params_f32 = init_decoder_params(key, p_dims, dtype=jnp.float32)
    ref = decoder_forward_ref(x, params_f32)

    # 1) f32 path, adaptive tiles — bit-tight check vs the pure-JAX reference.
    out = jax.block_until_ready(decoder_forward(x, params_f32))
    assert out.shape == (batch, p_dims[-1]) and out.dtype == jnp.float32
    assert jnp.allclose(out, ref, atol=1e-5, rtol=1e-5), "f32 mismatch vs reference"

    # 2) MXU-aligned (K-padded) weights: identical math, padded contraction dims.
    params_pad = pad_decoder_params_for_mxu(params_f32)
    out_pad = jax.block_until_ready(decoder_forward(x, params_pad))
    assert out_pad.shape == (batch, p_dims[-1])
    assert jnp.allclose(out_pad, ref, atol=1e-5, rtol=1e-5), "padded mismatch"

    # 3) bf16 weights/activations AND bf16 logits (v6e/v7x fast path):
    #    f32 MXU accumulation and f32 bias/tanh epilogue inside the kernel.
    params_bf16 = [(wt.astype(jnp.bfloat16), b.astype(jnp.bfloat16))
                   for wt, b in pad_decoder_params_for_mxu(params_f32)]
    out_bf16 = jax.block_until_ready(
        decoder_forward(x.astype(jnp.bfloat16), params_bf16))
    assert out_bf16.shape == (batch, p_dims[-1]) and out_bf16.dtype == jnp.bfloat16
    assert jnp.allclose(out_bf16.astype(jnp.float32), ref,
                        atol=5e-2, rtol=5e-2), "bf16 mismatch vs reference"

    # 4) Ragged tiles: batch % tile_b != 0 and out_f % tile_n != 0
    #    (exercises masked partial output tiles explicitly).
    out_rag = jax.block_until_ready(
        decoder_forward(x, params_f32, tile_n=128, tile_b=8))
    assert jnp.allclose(out_rag, ref, atol=1e-5, rtol=1e-5), "ragged-tile mismatch"

    print("KERNEL_OK")
</pallas_src>

<mosaic_0001>
module attributes {stable_mosaic.version = 11 : i64} {
  func.func @_fused_decoder_kernel(%arg0: i32, %arg1: i32, %arg2: memref<12x32xf32, #tpu.memory_space<vmem>>, %arg3: memref<32x64xf32, #tpu.memory_space<vmem>>, %arg4: memref<1x64xf32, #tpu.memory_space<vmem>>, %arg5: memref<64x200xf32, #tpu.memory_space<vmem>>, %arg6: memref<1x200xf32, #tpu.memory_space<vmem>>, %arg7: memref<12x200xf32, #tpu.memory_space<vmem>>) attributes {dimension_semantics = [#tpu.dimension_semantics<parallel>, #tpu.dimension_semantics<parallel>], iteration_bounds = array<i64: 1, 1>, scalar_prefetch = 0 : i64, scratch_operands = 0 : i64, tpu.core_type = #tpu.core_type<tc>, window_params = [{transform_indices = @transform_0, window_bounds = array<i64: 12, 32>}, {pipeline_mode = #tpu.pipeline_mode<synchronous>, transform_indices = @transform_1, window_bounds = array<i64: 32, 64>}, {pipeline_mode = #tpu.pipeline_mode<synchronous>, transform_indices = @transform_2, window_bounds = array<i64: 1, 64>}, {transform_indices = @transform_3, window_bounds = array<i64: 64, 200>}, {transform_indices = @transform_4, window_bounds = array<i64: 1, 200>}, {transform_indices = @transform_5, window_bounds = array<i64: 12, 200>}]} {
    %c0 = arith.constant 0 : index
    %c0_0 = arith.constant 0 : index
    %0 = vector.load %arg2[%c0, %c0_0] : memref<12x32xf32, #tpu.memory_space<vmem>>, vector<12x32xf32>
    %c0_1 = arith.constant 0 : index
    %c0_2 = arith.constant 0 : index
    %1 = vector.load %arg3[%c0_1, %c0_2] : memref<32x64xf32, #tpu.memory_space<vmem>>, vector<32x64xf32>
    %c0_3 = arith.constant 0 : index
    %c0_4 = arith.constant 0 : index
    %2 = vector.load %arg4[%c0_3, %c0_4] : memref<1x64xf32, #tpu.memory_space<vmem>>, vector<1x64xf32>
    %cst = arith.constant dense<0.000000e+00> : vector<12x64xf32>
    %3 = tpu.matmul %0, %1, %cst {dimension_numbers = #tpu.dot_dimension_numbers<[1], [0], [0], [1], [0, 0, 1, 1], [], []>} : vector<12x32xf32>, vector<32x64xf32>, vector<12x64xf32> -> vector<12x64xf32>
    %4 = vector.broadcast %2 : vector<1x64xf32> to vector<12x64xf32>
    %5 = arith.addf %3, %4 : vector<12x64xf32>
    %6 = math.tanh %5 : vector<12x64xf32>
    %c0_5 = arith.constant 0 : index
    %c0_6 = arith.constant 0 : index
    %7 = vector.load %arg5[%c0_5, %c0_6] : memref<64x200xf32, #tpu.memory_space<vmem>>, vector<64x200xf32>
    %c0_7 = arith.constant 0 : index
    %c0_8 = arith.constant 0 : index
    %8 = vector.load %arg6[%c0_7, %c0_8] : memref<1x200xf32, #tpu.memory_space<vmem>>, vector<1x200xf32>
    %cst_9 = arith.constant dense<0.000000e+00> : vector<12x200xf32>
    %9 = tpu.matmul %6, %7, %cst_9 {dimension_numbers = #tpu.dot_dimension_numbers<[1], [0], [0], [1], [0, 0, 1, 1], [], []>} : vector<12x64xf32>, vector<64x200xf32>, vector<12x200xf32> -> vector<12x200xf32>
    %10 = vector.broadcast %8 : vector<1x200xf32> to vector<12x200xf32>
    %11 = arith.addf %9, %10 : vector<12x200xf32>
    %c0_10 = arith.constant 0 : index
    %c0_11 = arith.constant 0 : index
    %12 = vector.load %arg7[%c0_10, %c0_11] : memref<12x200xf32, #tpu.memory_space<vmem>>, vector<12x200xf32>
    tpu.vector_store %arg7[%c0_10, %c0_11], %11 {strides = array<i32>} : memref<12x200xf32, #tpu.memory_space<vmem>>, vector<12x200xf32>,
    return
  }
  func.func @transform_0(%arg0: i32, %arg1: i32) -> (i32, i32) {
    %c0_i32 = arith.constant 0 : i32
    %c0_i32_0 = arith.constant 0 : i32
    return %arg1, %c0_i32 : i32, i32
  }
  func.func @transform_1(%arg0: i32, %arg1: i32) -> (i32, i32) {
    %c0_i32 = arith.constant 0 : i32
    %c0_i32_0 = arith.constant 0 : i32
    %c0_i32_1 = arith.constant 0 : i32
    return %c0_i32, %c0_i32_0 : i32, i32
  }
  func.func @transform_2(%arg0: i32, %arg1: i32) -> (i32, i32) {
    %c0_i32 = arith.constant 0 : i32
    %c0_i32_0 = arith.constant 0 : i32
    %c0_i32_1 = arith.constant 0 : i32
    return %c0_i32, %c0_i32_0 : i32, i32
  }
  func.func @transform_3(%arg0: i32, %arg1: i32) -> (i32, i32) {
    %c0_i32 = arith.constant 0 : i32
    %c0_i32_0 = arith.constant 0 : i32
    return %c0_i32, %arg0 : i32, i32
  }
  func.func @transform_4(%arg0: i32, %arg1: i32) -> (i32, i32) {
    %c0_i32 = arith.constant 0 : i32
    %c0_i32_0 = arith.constant 0 : i32
    return %c0_i32, %arg0 : i32, i32
  }
  func.func @transform_5(%arg0: i32, %arg1: i32) -> (i32, i32) {
    %c0_i32 = arith.constant 0 : i32
    return %arg1, %arg0 : i32, i32
  }
}

</mosaic_0001>

<bundles_post_ra>
// kernel: tpu_custom_call.1
= control target key start
LH: loop header
LB: loop body
LE: loop exit
PB: predicated region body
PF: predicated region fallthrough
CT: control target
= control target key end

     0   :  { %10 = vsyncpa [#allocation3], 0  ;;  %s556_s0 = inlined_call_operand.hbm [shape: f32[12,32], index: 0, kind: input, shape index: {}]   ;;  %s557_s1 = inlined_call_operand.hbm [shape: f32[32,64], index: 1, kind: input, shape index: {}]   ;;  %s558_s2 = inlined_call_operand.vmem [shape: f32[1,64], index: 2, kind: input, shape index: {}]   ;;  %s559_s3 = inlined_call_operand.hbm [shape: f32[64,200], index: 3, kind: input, shape index: {}]   ;;  %s560_s4 = inlined_call_operand.vmem [shape: f32[1,200], index: 4, kind: input, shape index: {}]   ;;  %s561_s5 = inlined_call_operand.hbm [shape: f32[12,200], index: 5, kind: output, shape index: {}]  }
   0x1   :  { %11 = vsyncpa [#allocation6], 0 }
   0x2   :  { %12 = vsyncpa [#allocation4], 0  ;;  %s448_s18 = smov [#allocation5]   ;;  %s449_s20 = smov [#allocation2]  }
   0x3   :  { %s30_s19 = sshll.u32 %s448_s18, 4  ;;  %s18_s21 = sshll.u32 %s449_s20, 4  ;;  %s31_s19 = int_to_ptr.vmem [resolvable:$true] %s30_s19  ;;  %s487_s21 = int_to_ptr.vmem [resolvable:$true] %s18_s21 }
   0x4   :  { %s354_s24 = scalar_lea.hbm %s557_s1, 512 }
   0x5   :  { %p355_p0 = scmp.ne.s32.totalorder %s557_s1, %s354_s24  ;;  %p358_p1 = scmp.lt.u32.totalorder %s354_s24, %s557_s1 }
   0x7   :  { %p360_p2 = pnand %p358_p1, %p355_p0 }
   0x9   :  { %363 = shalt.err (!%p360_p2)
}
   0xa   :  { %s364_s29 = scalar_lea.vmem %s31_s19, 512  ;;  %p369_p4 = scmp.lt.s32.totalorder %s31_s19, %s31_s19 }
   0xb   :  { %p365_p3 = scmp.ne.s32.totalorder %s31_s19, %s364_s29  ;;  %p370_p5 = scmp.lt.s32.totalorder %s364_s29, %s364_s29 }
   0xd   :  { %p371_p6 = por %p370_p5, %p369_p4 }
   0xf   :  { %p372_p7 = pnand %p371_p6, %p365_p3 }
  0x11   :  { %375 = shalt.err (!%p372_p7)
}
  0x12   :  { %s450_s30 = smov 128   ;;  %s451_s6 = smov 8  }
  0x13   :  { %36 = dma.hbm_to_vmem [thread:$0]  %s557_s1, 512, %s31_s19, [#allocation6], %s450_s30, %s450_s30, %s451_s6  }
  0x14   :  { %s376_s11 = scalar_lea.hbm %s556_s0, 256 }
  0x15   :  { %p377_p8 = scmp.ne.s32.totalorder %s556_s0, %s376_s11  ;;  %p380_p9 = scmp.lt.u32.totalorder %s376_s11, %s556_s0 }
  0x17   :  { %p382_p10 = pnand %p380_p9, %p377_p8 }
  0x19   :  { %385 = shalt.err (!%p382_p10)
}
  0x1a   :  { %s386_s16 = scalar_lea.vmem %s487_s21, 256  ;;  %p391_p12 = scmp.lt.s32.totalorder %s487_s21, %s487_s21 }
  0x1b   :  { %p387_p11 = scmp.ne.s32.totalorder %s487_s21, %s386_s16  ;;  %p392_p13 = scmp.lt.s32.totalorder %s386_s16, %s386_s16 }
  0x1d   :  { %p393_p0 = por %p392_p13, %p391_p12 }
  0x1f   :  { %p394_p1 = pnand %p393_p0, %p387_p11 }
  0x21   :  { %397 = shalt.err (!%p394_p1)
}
  0x22   :  { %24 = dma.hbm_to_vmem [thread:$0]  %s556_s0, 256, %s487_s21, [#allocation3], %s450_s30, %s450_s30, %s451_s6  }
  0x23   :  { %s452_s18 = smov [#allocation7]   ;;  %s398_s23 = scalar_lea.hbm %s559_s3, 2048 }
  0x24   :  { %s44_s19 = sshll.u32 %s452_s18, 4  ;;  %p399_p2 = scmp.ne.s32.totalorder %s559_s3, %s398_s23  ;;  %s45_s19 = int_to_ptr.vmem [resolvable:$true] %s44_s19 }
  0x25   :  { %p402_p3 = scmp.lt.u32.totalorder %s398_s23, %s559_s3 }
  0x27   :  { %p404_p4 = pnand %p402_p3, %p399_p2 }
  0x29   :  { %407 = shalt.err (!%p404_p4)
}
  0x2a   :  { %s408_s28 = scalar_lea.vmem %s45_s19, 2048  ;;  %p413_p6 = scmp.lt.s32.totalorder %s45_s19, %s45_s19 }
  0x2b   :  { %p409_p5 = scmp.ne.s32.totalorder %s45_s19, %s408_s28  ;;  %p414_p7 = scmp.lt.s32.totalorder %s408_s28, %s408_s28 }
  0x2d   :  { %p415_p8 = por %p414_p7, %p413_p6 }
  0x2f   :  { %p416_p9 = pnand %p415_p8, %p409_p5 }
  0x31   :  { %419 = shalt.err (!%p416_p9)
}
  0x32   :  { %s453_s0 = smov 256   ;;  %s454_s21 = smov 16  }
  0x33   :  { %50 = dma.hbm_to_vmem [thread:$0]  %s559_s3, 2048, %s45_s19, [#allocation6], %s453_s0, %s453_s0, %s454_s21  }
  0x34   :  { %442 = dma.done.wait [#allocation3], 256  }
  0x35   :  { %443 = vsyncadd [#allocation3], 4294967040 }
  0x36   :  { %444 = dma.done.wait [#allocation6], 2560  }
  0x37   :  { %445 = vsyncadd [#allocation6], 4294964736  ;;  %vm75_vm0 = vcmask 261120   ;;  %v64_v0 = vld [vmem:[#allocation5] sm:$0xff]  ;;  %v65_v1 = vld [vmem:[#allocation5 + $0x8] sm:$0xff]  ;;  %v455_v27 = vmov 0.0   ;;  %v177_v40 = vlaneseq }
  0x38   :  { %v66_v2 = vld [vmem:[#allocation5 + $0x10] sm:$0xff]  ;;  %v317_v3 = vpack.c.bf16 %v65_v1, %v64_v0  ;;  %v67_v4 = vld [vmem:[#allocation5 + $0x18] sm:$0xff]  ;;  %v160_v7 = vld [vmem:[#allocation7 + $0x8] sm:$0xff]  ;;  %258 = vmatprep.mubr.f32.mxu1 %v455_v27  ;;  %vm187_vm1 = vcmask 523264   ;;  %vm272_vm2 = vcmask 588800   ;;  %vm275_vm3 = vcmask 584704  }
  0x39   :  { %v62_v5 = vld [vmem:[#allocation2] sm:$0xff]  ;;  %v321_v6 = vpack.c.bf16 %v67_v4, %v66_v2  ;;  %v162_v8 = vld [vmem:[#allocation7 + $0x18] sm:$0xff]  ;;  %v159_v11 = vld [vmem:[#allocation7] sm:$0xff]  ;;  %v178_v41 = vshrl.u32 %v177_v40, 7 }
  0x3a   :  { %314 = vmatprep.mubr.msk.f32.mxu0 %vm75_vm0, %v62_v5  ;;  %318 = vmatprep.subr.bf16.mxu0 %v317_v3  ;;  %v325_v9 = vpack.c.bf16 %v162_v8, %v160_v7  ;;  %v63_v10 = vld [vmem:[#allocation2 + $0x8] sm:$0xf]  ;;  %v161_v12 = vld [vmem:[#allocation7 + $0x10] sm:$0xff]  ;;  %v164_v14 = vld [vmem:[#allocation7 + $0x28] sm:$0xff] }
  0x3b   :  { %320 = vmatpush3.bf16.msra.mxu0 %v317_v3  ;;  %v327_v13 = vpack.c.bf16 %v161_v12, %v159_v11  ;;  %v166_v15 = vld [vmem:[#allocation7 + $0x38] sm:$0xff]  ;;  %v163_v17 = vld [vmem:[#allocation7 + $0x20] sm:$0xff]  ;;  %v165_v18 = vld [vmem:[#allocation7 + $0x30] sm:$0xff]  ;;  %v179_v42 = vsub.s32 0, %v178_v41  ;;  %v183_v44 = vsub.s32 1, %v178_v41 }
  0x3c   :  { %322 = vmatprep.subr.bf16.mxu0 %v321_v6  ;;  %326 = vmatprep.subr.bf16.mxu1 %v325_v9  ;;  %v329_v16 = vpack.c.bf16 %v166_v15, %v164_v14  ;;  %v331_v19 = vpack.c.bf16 %v165_v18, %v163_v17  ;;  %v168_v20 = vld [vmem:[#allocation7 + $0x48] sm:$0xff]  ;;  %v170_v21 = vld [vmem:[#allocation7 + $0x58] sm:$0xff]  ;;  %v167_v22 = vld [vmem:[#allocation7 + $0x40] sm:$0xff] }
  0x3d   :  { %328 = vmatpush1.bf16.msra.mxu1 %v327_v13  ;;  %v333_v23 = vpack.c.bf16 %v170_v21, %v168_v20  ;;  %v169_v24 = vld [vmem:[#allocation7 + $0x50] sm:$0xff]  ;;  %v172_v25 = vld [vmem:[#allocation7 + $0x68] sm:$0xff]  ;;  %v174_v26 = vld [vmem:[#allocation7 + $0x78] sm:$0xff] }
  0x3e   :  { %330 = vmatprep.subr.bf16.mxu1 %v329_v16  ;;  %v335_v28 = vpack.c.bf16 %v169_v24, %v167_v22  ;;  %v337_v29 = vpack.c.bf16 %v174_v26, %v172_v25  ;;  %v171_v30 = vld [vmem:[#allocation7 + $0x60] sm:$0xff]  ;;  %v173_v31 = vld [vmem:[#allocation7 + $0x70] sm:$0xff] }
  0x3f   :  { %324 = vmatpush3.bf16.msra.mxu0 %v321_v6  ;;  %v339_v32 = vpack.c.bf16 %v173_v31, %v171_v30  ;;  %v295_v33 = vld [vmem:[%s558_s2] ss:$0 sm:$0xff]  ;;  %s456_s2 = smov [#allocation8]  }
  0x40   :  { %v175_v43 = vld [vmem:[%s560_s4] sm:$0x3]  ;;  %s282_s9 = sshll.u32 %s456_s2, 4  ;;  %s283_s9 = int_to_ptr.vmem [resolvable:$true] %s282_s9 }
  0x41   :  { %332 = vmatpush1.bf16.msra.mxu1 %v331_v19  ;;  %v180_v45 = vrot.slane %v175_v43, %v179_v42  ;;  %v184_v46 = vrot.slane %v175_v43, %v183_v44  ;;  %s420_s4 = scalar_lea.vmem %s283_s9, 512  ;;  %p425_p11 = scmp.lt.s32.totalorder %s283_s9, %s283_s9 }
  0x42   :  { %315 = vmatmul.mubr.msk.f32.vlgmr.msra.gmra.mrb[0].mxu0 %vm75_vm0, %v63_v10  ;;  %334 = vmatprep.subr.bf16.mxu1 %v333_v23  ;;  %p421_p10 = scmp.ne.s32.totalorder %s283_s9, %s420_s4  ;;  %p426_p12 = scmp.lt.s32.totalorder %s420_s4, %s420_s4 }
  0x44   :  { %p427_p13 = por %p426_p12, %p425_p11 }
  0x45   :  { %336 = vmatpush1.bf16.msra.mxu1 %v335_v28 }
  0x46   :  { %338 = vmatprep.subr.bf16.mxu1 %v337_v29  ;;  %p428_p0 = pnand %p427_p13, %p421_p10 }
  0x49   :  { %340 = vmatpush1.bf16.msra.mxu1 %v339_v32 }
 0x115   :  { %v316_v34 = vpop.f32.mrb[0].mxu0 }
 0x116   :  { %v148_v35 = vpop.f32.mrb[1].mxu0  ;;  %v154_v37 = vadd.f32 %v316_v34, %v295_v33 }
 0x117   :  { %v149_v36 = vadd.f32 %v295_v33, %v148_v35 }
 0x119   :  { %350 = vtanh.f32 %v149_v36 }
 0x11a   :  { %352 = vtanh.f32 %v154_v37 }
 0x123   :  { %v351_v38 = vpop.eup %350 }
 0x124   :  { %298 = vmatmul.mubr.msk.f32.vlgmr.msra.gmra.mrb[0].mxu1 %vm187_vm1, %v351_v38  ;;  %v353_v39 = vpop.eup %352 }
 0x125   :  { %264 = vmatprep.mubr.f32.mxu1 %v455_v27 }
 0x128   :  { %299 = vmatmul.mubr.msk.f32.gmra.mrb[2].mxu1 %vm187_vm1, %v353_v39 }
 0x1f7   :  { %v260_v47 = vpop.f32.mrb[0].mxu1 }
 0x1f8   :  { %v261_v48 = vadd.f32 %v260_v47, %v180_v45  ;;  %v262_v49 = vpop.f32.mrb[1].mxu1 }
 0x1f9   :  { %v263_v50 = vadd.f32 %v262_v49, %v184_v46 }
 0x1fa   :  { %271 = vst [vmem:[#allocation8] sm:$0xff] %v261_v48 }
 0x1fb   :  { %273 = vst.msk [vmem:[#allocation8 + $0x8] sm:$0xff] %vm272_vm2, %v263_v50  ;;  %v266_v51 = vpop.f32.mrb[2].mxu1 }
 0x1fc   :  { %v267_v52 = vadd.f32 %v266_v51, %v180_v45  ;;  %v268_v53 = vpop.f32.mrb[3].mxu1 }
 0x1fd   :  { %v269_v54 = vadd.f32 %v268_v53, %v184_v46 }
 0x1fe   :  { %274 = vst [vmem:[#allocation8 + $0x10] sm:$0xf] %v267_v52 }
 0x1ff   :  { %276 = vst.msk [vmem:[#allocation8 + $0x18] sm:$0xf] %vm275_vm3, %v269_v54 }
 0x200   :  { %431 = shalt.err (!%p428_p0)
}
 0x201   :  { %s432_s12 = scalar_lea.hbm %s561_s5, 512 }
 0x202   :  { %p433_p1 = scmp.ne.s32.totalorder %s561_s5, %s432_s12  ;;  %p436_p2 = scmp.lt.u32.totalorder %s432_s12, %s561_s5 }
 0x204   :  { %p438_p3 = pnand %p436_p2, %p433_p1 }
 0x206   :  { %441 = shalt.err (!%p438_p3)
}
 0x207   :  { %288 = dma.vmem_to_hbm [thread:$0]  %s283_s9, 512, %s561_s5, [#allocation4], %s453_s0, %s453_s0, %s454_s21  }
 0x208   :  { %446 = dma.done.wait [#allocation4], 512  }
 0x209   :  { %447 = vsyncadd [#allocation4], 4294966784 }
 0x20a   :  { %292 = vsyncpa [#allocation3], 1 }
 0x20b   :  { %293 = vsyncpa [#allocation6], 1 }
 0x20c   :  { %294 = vsyncpa [#allocation4], 1 }

</bundles_post_ra>
